<compile_context>
chip_gen: v7x
topology: tpu7x:2x2x1
jax: 0.10.0
libtpu: 0.0.40
codegen_flags: <defaults>
</compile_context>

<pallas_src>
import math
from functools import partial

import jax
import jax.numpy as jnp
import numpy as np
from jax.experimental import pallas as pl
from jax.experimental.pallas import tpu as pltpu


def _round_up(v: int, mult: int) -> int:
    return ((v + mult - 1) // mult) * mult


def _const_col(values, rows):
    """(rows, 1) f32 column with col[i] = values[i].

    Built from iota + scalar constants + selects so the kernel never relies on
    dense array constants; cost is negligible (tiny shape, once per grid step).
    """
    idx = jax.lax.broadcasted_iota(jnp.int32, (rows, 1), 0)
    col = jnp.full((rows, 1), jnp.float32(values[0]))
    for i in range(1, rows):
        col = jnp.where(idx == i, jnp.float32(values[i]), col)
    return col


def _harmonic_kernel(x_ref, o_ref, *, freqs, dim, append_input):
    # x_ref: (dim, tm)   o_ref: (out_dim, tm)   channels-first, tm = lanes.
    n = len(freqs)
    x = x_ref[...]                                    # (dim, tm)
    f_col = _const_col(freqs, n)                      # (n, 1) compile-time freqs
    for d in range(dim):
        xd = x[d:d + 1, :]                            # (1, tm)
        phase = xd * f_col                            # (n, tm) lane-dense
        o_ref[d * n:(d + 1) * n, :] = jnp.sin(phase)
        o_ref[dim * n + d * n:dim * n + (d + 1) * n, :] = jnp.cos(phase)
    if append_input:
        o_ref[2 * dim * n:, :] = x


def _harmonic_kernel_cov(x_ref, cov_ref, o_ref, *, freqs, dim, append_input):
    # MIP-NeRF integrated positional encoding path (diag_cov provided).
    n = len(freqs)
    x = x_ref[...]                                    # (dim, tm)
    cov = cov_ref[...]                                # (dim, tm)
    f_col = _const_col(freqs, n)                                      # (n, 1)
    nhalf_f2 = _const_col(tuple(-0.5 * f * f for f in freqs), n)      # (n, 1)
    for d in range(dim):
        xd = x[d:d + 1, :]
        cd = cov[d:d + 1, :]
        phase = xd * f_col                            # (n, tm)
        att = jnp.exp(cd * nhalf_f2)                  # (n, tm)  exp -> EUP slot
        o_ref[d * n:(d + 1) * n, :] = jnp.sin(phase) * att
        o_ref[dim * n + d * n:dim * n + (d + 1) * n, :] = jnp.cos(phase) * att
    if append_input:
        o_ref[2 * dim * n:, :] = x


class HarmonicEmbeddingPallas:
    def __init__(self, n_harmonic_functions: int = 6, omega_0: float = 1.0,
                 logspace: bool = True, append_input: bool = True):
        if logspace:
            freqs = 2.0 ** np.arange(n_harmonic_functions, dtype=np.float64)
        else:
            freqs = np.linspace(1.0, 2.0 ** (n_harmonic_functions - 1),
                                n_harmonic_functions, dtype=np.float64)
        freqs = (freqs * omega_0).astype(np.float32)
        self.n_harmonic = n_harmonic_functions
        self.append_input = append_input
        self._freqs_tuple = tuple(float(f) for f in freqs)   # baked into kernel
        self.frequencies = jnp.asarray(freqs)                # for the reference

    def get_output_dim(self, input_dims: int = 3) -> int:
        return input_dims * (2 * self.n_harmonic + int(self.append_input))

    def __call__(self, x, diag_cov=None, *, tile_points: int = 2048):
        x = jnp.asarray(x, jnp.float32)
        lead, dim = x.shape[:-1], x.shape[-1]
        out_dim = self.get_output_dim(dim)
        m = int(np.prod(lead)) if lead else 1

        # Channels-first: points -> lanes (fast axis), features -> sublanes.
        xt = x.reshape(m, dim).T                      # (dim, m)

        # Tile over points (lane axis), multiple of 128 lanes.  No wrapper pad:
        # the ragged last block is masked by Pallas.  Keep >= ~8 grid steps when
        # the input is large enough (feeds v7x's two TensorCores + the pipeline).
        tile_points = _round_up(max(int(tile_points), 128), 128)
        m128 = _round_up(m, 128)
        tm = min(tile_points, m128)
        if m128 >= 8 * 512:
            tm = min(tm, max(512, _round_up(pl.cdiv(m, 8), 128)))
        tm = max(128, tm)
        grid = (pl.cdiv(m, tm),)

        x_spec = pl.BlockSpec((dim, tm), lambda i: (0, i))
        cov_spec = pl.BlockSpec((dim, tm), lambda i: (0, i))
        o_spec = pl.BlockSpec((out_dim, tm), lambda i: (0, i))
        out_shape = jax.ShapeDtypeStruct((out_dim, m), jnp.float32)
        cparams = pltpu.CompilerParams(dimension_semantics=("parallel",))

        if diag_cov is None:
            out_t = pl.pallas_call(
                partial(_harmonic_kernel, freqs=self._freqs_tuple, dim=dim,
                        append_input=self.append_input),
                out_shape=out_shape,
                grid_spec=pltpu.PrefetchScalarGridSpec(
                    num_scalar_prefetch=0, grid=grid,
                    in_specs=[x_spec], out_specs=o_spec),
                compiler_params=cparams,
            )(xt)
        else:
            cov_t = jnp.asarray(diag_cov, jnp.float32).reshape(m, dim).T
            out_t = pl.pallas_call(
                partial(_harmonic_kernel_cov, freqs=self._freqs_tuple, dim=dim,
                        append_input=self.append_input),
                out_shape=out_shape,
                grid_spec=pltpu.PrefetchScalarGridSpec(
                    num_scalar_prefetch=0, grid=grid,
                    in_specs=[x_spec, cov_spec], out_specs=o_spec),
                compiler_params=cparams,
            )(xt, cov_t)

        # Back to channels-last [..., out_dim] to match the PyTorch module.
        # TODO(synk): skip this transpose when the downstream consumer accepts
        # channels-first activations (saves one HBM pass over the output).
        return out_t.T.reshape(*lead, out_dim)


def harmonic_embedding_ref(x, freqs, diag_cov=None, append_input=True):
    # Pure-JAX transcription of the PyTorch forward (reference for correctness).
    embed = x[..., None] * freqs
    embed = embed[..., None, :, :] + jnp.array([0.0, 0.5 * math.pi],
                                               jnp.float32)[:, None, None]
    embed = jnp.sin(embed)
    if diag_cov is not None:
        x_var = diag_cov[..., None] * freqs ** 2
        exp_var = jnp.exp(-0.5 * x_var)
        embed = embed * exp_var[..., None, :, :]
    embed = embed.reshape(*x.shape[:-1], -1)
    if append_input:
        embed = jnp.concatenate([embed, x], axis=-1)
    return embed


if __name__ == "__main__":
    key = jax.random.PRNGKey(0)
    k1, k2, k3 = jax.random.split(key, 3)

    he = HarmonicEmbeddingPallas(n_harmonic_functions=6, omega_0=1.0,
                                 logspace=True, append_input=True)

    # x: [..., dim] -> batch=2, points=64, dim=3 (xyz)  => 128 points total.
    x = jax.random.normal(k1, (2, 64, 3), dtype=jnp.float32)
    diag_cov = jax.random.uniform(k2, (2, 64, 3), dtype=jnp.float32) * 0.1

    # Classical NeRF path (diag_cov=None).
    out = jax.block_until_ready(he(x))
    ref = harmonic_embedding_ref(x, he.frequencies, None, True)
    assert out.shape == (2, 64, he.get_output_dim(3))
    np.testing.assert_allclose(np.asarray(out), np.asarray(ref),
                               atol=1e-5, rtol=1e-5)

    # MIP-NeRF integrated-PE path (diag_cov provided).
    out_cov = jax.block_until_ready(he(x, diag_cov))
    ref_cov = harmonic_embedding_ref(x, he.frequencies, diag_cov, True)
    np.testing.assert_allclose(np.asarray(out_cov), np.asarray(ref_cov),
                               atol=1e-5, rtol=1e-5)

    # Ragged point count (not a multiple of the 128-lane tile) exercises the
    # no-pad path where Pallas masks the last block.
    x_r = jax.random.normal(k3, (2, 50, 3), dtype=jnp.float32)
    out_r = jax.block_until_ready(he(x_r))
    ref_r = harmonic_embedding_ref(x_r, he.frequencies, None, True)
    np.testing.assert_allclose(np.asarray(out_r), np.asarray(ref_r),
                               atol=1e-5, rtol=1e-5)

    print("KERNEL_OK")
</pallas_src>

<mosaic_0001>
module attributes {stable_mosaic.version = 11 : i64} {
  func.func @_harmonic_kernel(%arg0: i32, %arg1: memref<3x128xf32, #tpu.memory_space<vmem>>, %arg2: memref<39x128xf32, #tpu.memory_space<vmem>>) attributes {dimension_semantics = [#tpu.dimension_semantics<parallel>], iteration_bounds = array<i64: 1>, scalar_prefetch = 0 : i64, scratch_operands = 0 : i64, tpu.core_type = #tpu.core_type<tc>, window_params = [{transform_indices = @transform_0, window_bounds = array<i64: 3, 128>}, {transform_indices = @transform_1, window_bounds = array<i64: 39, 128>}]} {
    %c0 = arith.constant 0 : index
    %c0_0 = arith.constant 0 : index
    %0 = vector.load %arg1[%c0, %c0_0] : memref<3x128xf32, #tpu.memory_space<vmem>>, vector<3x128xf32>
    %1 = tpu.iota {dimensions = array<i32: 0>} : vector<6x1xi32>
    %cst = arith.constant 1.000000e+00 : f32
    %2 = vector.broadcast %cst : f32 to vector<6x1xf32>
    %c1_i32 = arith.constant 1 : i32
    %3 = vector.broadcast %c1_i32 : i32 to vector<6x1xi32>
    %4 = arith.cmpi eq, %1, %3 : vector<6x1xi32>
    %cst_1 = arith.constant 2.000000e+00 : f32
    %5 = vector.broadcast %cst_1 : f32 to vector<6x1xf32>
    %6 = arith.select %4, %5, %2 : vector<6x1xi1>, vector<6x1xf32>
    %c2_i32 = arith.constant 2 : i32
    %7 = vector.broadcast %c2_i32 : i32 to vector<6x1xi32>
    %8 = arith.cmpi eq, %1, %7 : vector<6x1xi32>
    %cst_2 = arith.constant 4.000000e+00 : f32
    %9 = vector.broadcast %cst_2 : f32 to vector<6x1xf32>
    %10 = arith.select %8, %9, %6 : vector<6x1xi1>, vector<6x1xf32>
    %c3_i32 = arith.constant 3 : i32
    %11 = vector.broadcast %c3_i32 : i32 to vector<6x1xi32>
    %12 = arith.cmpi eq, %1, %11 : vector<6x1xi32>
    %cst_3 = arith.constant 8.000000e+00 : f32
    %13 = vector.broadcast %cst_3 : f32 to vector<6x1xf32>
    %14 = arith.select %12, %13, %10 : vector<6x1xi1>, vector<6x1xf32>
    %c4_i32 = arith.constant 4 : i32
    %15 = vector.broadcast %c4_i32 : i32 to vector<6x1xi32>
    %16 = arith.cmpi eq, %1, %15 : vector<6x1xi32>
    %cst_4 = arith.constant 1.600000e+01 : f32
    %17 = vector.broadcast %cst_4 : f32 to vector<6x1xf32>
    %18 = arith.select %16, %17, %14 : vector<6x1xi1>, vector<6x1xf32>
    %c5_i32 = arith.constant 5 : i32
    %19 = vector.broadcast %c5_i32 : i32 to vector<6x1xi32>
    %20 = arith.cmpi eq, %1, %19 : vector<6x1xi32>
    %cst_5 = arith.constant 3.200000e+01 : f32
    %21 = vector.broadcast %cst_5 : f32 to vector<6x1xf32>
    %22 = arith.select %20, %21, %18 : vector<6x1xi1>, vector<6x1xf32>
    %23 = vector.extract_strided_slice %0 {offsets = [0, 0], sizes = [1, 128], strides = [1, 1]} : vector<3x128xf32> to vector<1x128xf32>
    %24 = vector.broadcast %23 : vector<1x128xf32> to vector<6x128xf32>
    %25 = vector.broadcast %22 : vector<6x1xf32> to vector<6x128xf32>
    %26 = arith.mulf %24, %25 : vector<6x128xf32>
    %27 = math.sin %26 : vector<6x128xf32>
    %c0_6 = arith.constant 0 : index
    %c0_7 = arith.constant 0 : index
    %28 = vector.load %arg2[%c0_6, %c0_7] : memref<39x128xf32, #tpu.memory_space<vmem>>, vector<6x128xf32>
    tpu.vector_store %arg2[%c0_6, %c0_7], %27 {strides = array<i32>} : memref<39x128xf32, #tpu.memory_space<vmem>>, vector<6x128xf32>,
    %29 = math.cos %26 : vector<6x128xf32>
    %c18 = arith.constant 18 : index
    %c0_8 = arith.constant 0 : index
    %30 = vector.load %arg2[%c18, %c0_8] : memref<39x128xf32, #tpu.memory_space<vmem>>, vector<6x128xf32>
    tpu.vector_store %arg2[%c18, %c0_8], %29 {strides = array<i32>} : memref<39x128xf32, #tpu.memory_space<vmem>>, vector<6x128xf32>,
    %31 = vector.extract_strided_slice %0 {offsets = [1, 0], sizes = [1, 128], strides = [1, 1]} : vector<3x128xf32> to vector<1x128xf32>
    %32 = vector.broadcast %31 : vector<1x128xf32> to vector<6x128xf32>
    %33 = vector.broadcast %22 : vector<6x1xf32> to vector<6x128xf32>
    %34 = arith.mulf %32, %33 : vector<6x128xf32>
    %35 = math.sin %34 : vector<6x128xf32>
    %c6 = arith.constant 6 : index
    %c0_9 = arith.constant 0 : index
    %36 = vector.load %arg2[%c6, %c0_9] : memref<39x128xf32, #tpu.memory_space<vmem>>, vector<6x128xf32>
    tpu.vector_store %arg2[%c6, %c0_9], %35 {strides = array<i32>} : memref<39x128xf32, #tpu.memory_space<vmem>>, vector<6x128xf32>,
    %37 = math.cos %34 : vector<6x128xf32>
    %c24 = arith.constant 24 : index
    %c0_10 = arith.constant 0 : index
    %38 = vector.load %arg2[%c24, %c0_10] : memref<39x128xf32, #tpu.memory_space<vmem>>, vector<6x128xf32>
    tpu.vector_store %arg2[%c24, %c0_10], %37 {strides = array<i32>} : memref<39x128xf32, #tpu.memory_space<vmem>>, vector<6x128xf32>,
    %39 = vector.extract_strided_slice %0 {offsets = [2, 0], sizes = [1, 128], strides = [1, 1]} : vector<3x128xf32> to vector<1x128xf32>
    %40 = vector.broadcast %39 : vector<1x128xf32> to vector<6x128xf32>
    %41 = vector.broadcast %22 : vector<6x1xf32> to vector<6x128xf32>
    %42 = arith.mulf %40, %41 : vector<6x128xf32>
    %43 = math.sin %42 : vector<6x128xf32>
    %c12 = arith.constant 12 : index
    %c0_11 = arith.constant 0 : index
    %44 = vector.load %arg2[%c12, %c0_11] : memref<39x128xf32, #tpu.memory_space<vmem>>, vector<6x128xf32>
    tpu.vector_store %arg2[%c12, %c0_11], %43 {strides = array<i32>} : memref<39x128xf32, #tpu.memory_space<vmem>>, vector<6x128xf32>,
    %45 = math.cos %42 : vector<6x128xf32>
    %c30 = arith.constant 30 : index
    %c0_12 = arith.constant 0 : index
    %46 = vector.load %arg2[%c30, %c0_12] : memref<39x128xf32, #tpu.memory_space<vmem>>, vector<6x128xf32>
    tpu.vector_store %arg2[%c30, %c0_12], %45 {strides = array<i32>} : memref<39x128xf32, #tpu.memory_space<vmem>>, vector<6x128xf32>,
    %c36 = arith.constant 36 : index
    %c0_13 = arith.constant 0 : index
    %47 = vector.load %arg2[%c36, %c0_13] : memref<39x128xf32, #tpu.memory_space<vmem>>, vector<3x128xf32>
    tpu.vector_store %arg2[%c36, %c0_13], %0 {strides = array<i32>} : memref<39x128xf32, #tpu.memory_space<vmem>>, vector<3x128xf32>,
    return
  }
  func.func @transform_0(%arg0: i32) -> (i32, i32) {
    %c0_i32 = arith.constant 0 : i32
    %c0_i32_0 = arith.constant 0 : i32
    return %c0_i32, %arg0 : i32, i32
  }
  func.func @transform_1(%arg0: i32) -> (i32, i32) {
    %c0_i32 = arith.constant 0 : i32
    %c0_i32_0 = arith.constant 0 : i32
    return %c0_i32, %arg0 : i32, i32
  }
}

</mosaic_0001>

<bundles_post_ra>
// kernel: tpu_custom_call.1
= control target key start
LH: loop header
LB: loop body
LE: loop exit
PB: predicated region body
PF: predicated region fallthrough
CT: control target
= control target key end

     0   :  { %6 = vsyncpa [#allocation3], 0  ;;  %s1018_s0 = inlined_call_operand.hbm [shape: f32[3,128], index: 0, kind: input, shape index: {}]   ;;  %s1019_s1 = inlined_call_operand.hbm [shape: f32[39,128], index: 1, kind: output, shape index: {}]  }
   0x1   :  { %7 = vsyncpa [#allocation4], 0  ;;  %s801_s6 = smov [#allocation2]   ;;  %s753_s10 = scalar_lea.hbm %s1018_s0, 64 }
   0x2   :  { %s14_s7 = sshll.u32 %s801_s6, 4  ;;  %p754_p0 = scmp.ne.s32.totalorder %s1018_s0, %s753_s10  ;;  %s15_s7 = int_to_ptr.vmem [resolvable:$true] %s14_s7 }
   0x3   :  { %p757_p1 = scmp.lt.u32.totalorder %s753_s10, %s1018_s0 }
   0x5   :  { %p759_p2 = pnand %p757_p1, %p754_p0 }
   0x7   :  { %762 = shalt.err (!%p759_p2)
}
   0x8   :  { %s763_s15 = scalar_lea.vmem %s15_s7, 64  ;;  %p768_p4 = scmp.lt.s32.totalorder %s15_s7, %s15_s7 }
   0x9   :  { %p764_p3 = scmp.ne.s32.totalorder %s15_s7, %s763_s15  ;;  %p769_p5 = scmp.lt.s32.totalorder %s763_s15, %s763_s15 }
   0xb   :  { %p770_p6 = por %p769_p5, %p768_p4 }
   0xd   :  { %p771_p7 = pnand %p770_p6, %p764_p3 }
   0xf   :  { %774 = shalt.err (!%p771_p7)
}
  0x10   :  { %17 = dma.hbm_to_vmem [thread:$0]  %s1018_s0, 64, %s15_s7, [#allocation3]  }
  0x11   :  { %797 = dma.done.wait [#allocation3], 64  }
  0x12   :  { %798 = vsyncadd [#allocation3], 4294967232  ;;  %v22_v0 = vlaneseq  ;;  %v802_v2 = vmov 1.0   ;;  %v21_v8 = vld [vmem:[#allocation2] sm:$0x7]  ;;  %s809_s0 = smov [#allocation5]  }
  0x13   :  { %676 = vst [vmem:[#allocation5 + $0x24] sm:$0x7] %v21_v8  ;;  %v803_v44 = vmov 683565275   ;;  %v804_v46 = vmov 2475754826  }
  0x14   :  { %v23_v1 = vshrl.u32 %v22_v0, 7  ;;  %v805_v48 = vmov 2131351028   ;;  %v806_v50 = vmov 2102212464   ;;  %s682_s18 = sshll.u32 %s809_s0, 4  ;;  %s683_s18 = int_to_ptr.vmem [resolvable:$true] %s682_s18 }
  0x15   :  { %v807_v52 = vmov 920167782   ;;  %v808_v60 = vmov 1326507024   ;;  %s775_s19 = scalar_lea.vmem %s683_s18, 640  ;;  %p780_p9 = scmp.lt.s32.totalorder %s683_s18, %s683_s18 }
  0x16   :  { %vm24_vm0 = vcmp.eq.s32.totalorder %v23_v1, 1  ;;  %vm26_vm1 = vcmp.eq.s32.totalorder %v23_v1, 2  ;;  %vm28_vm2 = vcmp.eq.s32.totalorder %v23_v1, 3  ;;  %vm30_vm3 = vcmp.eq.s32.totalorder %v23_v1, 4  ;;  %p776_p8 = scmp.ne.s32.totalorder %s683_s18, %s775_s19  ;;  %p781_p10 = scmp.lt.s32.totalorder %s775_s19, %s775_s19 }
  0x17   :  { %v25_v3 = vsel %vm24_vm0, 2.0, %v802_v2  ;;  %v36_v4 = vsub.s32 0, %v23_v1  ;;  %v250_v5 = vsub.s32 1, %v23_v1  ;;  %vm32_vm4 = vcmp.eq.s32.totalorder %v23_v1, 5 }
  0x18   :  { %v27_v6 = vsel %vm26_vm1, 4.0, %v25_v3  ;;  %v464_v7 = vsub.s32 2, %v23_v1  ;;  %p782_p11 = por %p781_p10, %p780_p9 }
  0x19   :  { %v29_v9 = vsel %vm28_vm2, 8.0, %v27_v6  ;;  %v37_v11 = vrot.slane %v21_v8, %v36_v4  ;;  %v251_v12 = vrot.slane %v21_v8, %v250_v5 }
  0x1a   :  { %v31_v10 = vsel %vm30_vm3, 16.0, %v29_v9  ;;  %v465_v13 = vrot.slane %v21_v8, %v464_v7  ;;  %p783_p12 = pnand %p782_p11, %p776_p8 }
  0x1b   :  { %v33_v14 = vsel %vm32_vm4, 32.0, %v31_v10 }
  0x1c   :  { %v834_v15 = vmul.f32 %v37_v11, %v33_v14  ;;  %v836_v16 = vmul.f32 %v251_v12, %v33_v14  ;;  %v838_v17 = vmul.f32 %v465_v13, %v33_v14 }
  0x1e   :  { %v39_v18 = vand.u32 2147483647, %v834_v15  ;;  %v42_v19 = vand.u32 2139095040, %v834_v15  ;;  %v253_v20 = vand.u32 2147483647, %v836_v16  ;;  %v256_v21 = vand.u32 2139095040, %v836_v16 }
  0x1f   :  { %v470_v26 = vand.u32 2139095040, %v838_v17 }
  0x20   :  { %v43_v22 = vshrl.u32 %v42_v19, 23  ;;  %v46_v23 = vand.u32 8388607, %v39_v18  ;;  %v257_v24 = vshrl.u32 %v256_v21, 23  ;;  %v260_v25 = vand.u32 8388607, %v253_v20 }
  0x21   :  { %v471_v29 = vshrl.u32 %v470_v26, 23 }
  0x22   :  { %v694_v27 = vadd.s32 4294967169, %v43_v22  ;;  %v702_v28 = vadd.s32 4294967169, %v257_v24  ;;  %v47_v31 = vor.u32 8388608, %v46_v23  ;;  %v261_v32 = vor.u32 8388608, %v260_v25 }
  0x23   :  { %v710_v34 = vadd.s32 4294967169, %v471_v29 }
  0x24   :  { %v49_v30 = vadd.s32 1, %v694_v27  ;;  %v263_v33 = vadd.s32 1, %v702_v28  ;;  %v849_v39 = vshll.u32 %v47_v31, 8  ;;  %v851_v41 = vshll.u32 %v261_v32, 8 }
  0x25   :  { %v853_v42 = vadd.s32 1, %v710_v34 }
  0x26   :  { %vm50_vm5 = vcmp.gt.s32.totalorder %v49_v30, 0  ;;  %vm264_vm6 = vcmp.gt.s32.totalorder %v263_v33, 0 }
  0x27   :  { %v51_v35 = vsel %vm50_vm5, %v49_v30, 0  ;;  %v265_v38 = vsel %vm264_vm6, %v263_v33, 0  ;;  %vm478_vm11 = vcmp.gt.s32.totalorder %v853_v42, 0 }
  0x28   :  { %v52_v36 = vshrl.u32 %v51_v35, 5  ;;  %v53_v37 = vand.u32 31, %v51_v35  ;;  %v267_v40 = vand.u32 31, %v265_v38  ;;  %v860_v54 = vshrl.u32 %v265_v38, 5 }
  0x2a   :  { %v54_v43 = vsub.s32 32, %v53_v37  ;;  %v56_v45 = vshll.u32 %v803_v44, %v53_v37  ;;  %v59_v47 = vshll.u32 %v804_v46, %v53_v37  ;;  %v62_v49 = vshll.u32 %v805_v48, %v53_v37 }
  0x2b   :  { %v65_v51 = vshll.u32 %v806_v50, %v53_v37  ;;  %v68_v53 = vshll.u32 %v807_v52, %v53_v37  ;;  %vm71_vm7 = vcmp.lt.s32.totalorder %v52_v36, 1  ;;  %vm72_vm8 = vcmp.lt.s32.totalorder %v52_v36, 2 }
  0x2c   :  { %v55_v55 = vshrl.u32 %v803_v44, %v54_v43  ;;  %v57_v56 = vshrl.u32 %v804_v46, %v54_v43  ;;  %v60_v57 = vshrl.u32 %v805_v48, %v54_v43  ;;  %v63_v58 = vshrl.u32 %v806_v50, %v54_v43 }
  0x2d   :  { %v66_v59 = vshrl.u32 %v807_v52, %v54_v43  ;;  %v69_v61 = vshrl.u32 %v808_v60, %v54_v43  ;;  %vm74_vm9 = vcmp.lt.s32.totalorder %v52_v36, 4  ;;  %v268_v1 = vsub.s32 32, %v267_v40 }
  0x2e   :  { %v58_v62 = vor.u32 %v57_v56, %v56_v45  ;;  %v61_v63 = vor.u32 %v60_v57, %v59_v47  ;;  %v64_v0 = vor.u32 %v63_v58, %v62_v49  ;;  %vm73_vm10 = vcmp.lt.s32.totalorder %v52_v36, 3 }
  0x2f   :  { %v67_v2 = vor.u32 %v66_v59, %v65_v51  ;;  %v70_v3 = vor.u32 %v69_v61, %v68_v53  ;;  %v270_v4 = vshll.u32 %v803_v44, %v267_v40  ;;  %v273_v12 = vshll.u32 %v804_v46, %v267_v40 }
  0x30   :  { %v75_v5 = vsel %vm71_vm7, %v55_v55, %v58_v62  ;;  %v76_v6 = vsel %vm74_vm9, %v64_v0, 2102212464  ;;  %v79_v7 = vsel %vm71_vm7, %v58_v62, %v61_v63  ;;  %v83_v8 = vsel %vm71_vm7, %v61_v63, %v64_v0 }
  0x31   :  { %v77_v9 = vsel %vm73_vm10, %v61_v63, %v76_v6  ;;  %v80_v10 = vsel %vm74_vm9, %v67_v2, 920167782  ;;  %v84_v11 = vsel %vm74_vm9, %v70_v3, 1326507024  ;;  %v269_v19 = vshrl.u32 %v803_v44, %v268_v1 }
  0x32   :  { %v81_v13 = vsel %vm73_vm10, %v64_v0, %v80_v10  ;;  %v85_v14 = vsel %vm73_vm10, %v67_v2, %v84_v11  ;;  %v271_v21 = vshrl.u32 %v804_v46, %v268_v1  ;;  %v78_v22 = vsel %vm72_vm8, %v75_v5, %v77_v9 }
  0x33   :  { %v82_v23 = vsel %vm72_vm8, %v79_v7, %v81_v13  ;;  %v86_v24 = vsel %vm72_vm8, %v83_v8, %v85_v14  ;;  %v274_v25 = vshrl.u32 %v805_v48, %v268_v1  ;;  %v276_v32 = vshll.u32 %v805_v48, %v267_v40 }
  0x34   :  { %v881_v26 = vmul.u32.u64.low %v849_v39, %v86_v24  ;;  %v882_v27 = vmul.u32.u64.high %v849_v39, %v86_v24, %v881_v26  ;;  %v885_v28 = vmul.u32.u64.low %v849_v39, %v82_v23  ;;  %v886_v29 = vmul.u32.u64.high %v849_v39, %v82_v23, %v885_v28 }
  0x35   :  { %v272_v30 = vor.u32 %v271_v21, %v270_v4  ;;  %v275_v31 = vor.u32 %v274_v25, %v273_v12  ;;  %v277_v33 = vshrl.u32 %v806_v50, %v268_v1  ;;  %v279_v34 = vshll.u32 %v806_v50, %v267_v40 }
  0x36   :  { %v280_v35 = vshrl.u32 %v807_v52, %v268_v1  ;;  %v282_v36 = vshll.u32 %v807_v52, %v267_v40  ;;  %v283_v37 = vshrl.u32 %v808_v60, %v268_v1  ;;  %v94_v38 = vmul.u32 %v849_v39, %v78_v22 }
  0x37   :  { %v278_v43 = vor.u32 %v277_v33, %v276_v32  ;;  %vm285_vm12 = vcmp.lt.s32.totalorder %v860_v54, 1  ;;  %vm286_vm13 = vcmp.lt.s32.totalorder %v860_v54, 2  ;;  %vm96_vm14 = vc.u32 %v882_v27, %v885_v28 }
  0x38   :  { %v97_v45 = vadd.s32 1, %v886_v29  ;;  %v281_v47 = vor.u32 %v280_v35, %v279_v34  ;;  %vm287_vm15 = vcmp.lt.s32.totalorder %v860_v54, 3  ;;  %v284_v49 = vor.u32 %v283_v37, %v282_v36 }
  0x39   :  { %vm288_vm0 = vcmp.lt.s32.totalorder %v860_v54, 4  ;;  %v289_v40 = vsel %vm285_vm12, %v269_v19, %v272_v30  ;;  %v293_v51 = vsel %vm285_vm12, %v272_v30, %v275_v31  ;;  %v297_v56 = vsel %vm285_vm12, %v275_v31, %v278_v43 }
  0x3a   :  { %v98_v39 = vsel %vm96_vm14, %v97_v45, %v886_v29  ;;  %v290_v53 = vsel %vm288_vm0, %v278_v43, 2102212464  ;;  %v294_v55 = vsel %vm288_vm0, %v281_v47, 920167782  ;;  %v298_v61 = vsel %vm288_vm0, %v284_v49, 1326507024 }
  0x3b   :  { %v99_v57 = vadd.s32 %v98_v39, %v94_v38  ;;  %v291_v58 = vsel %vm287_vm15, %v275_v31, %v290_v53  ;;  %v295_v59 = vsel %vm287_vm15, %v278_v43, %v294_v55  ;;  %v299_v0 = vsel %vm287_vm15, %v281_v47, %v298_v61 }
  0x3c   :  { %v292_v62 = vsel %vm286_vm13, %v289_v40, %v291_v58  ;;  %v296_v63 = vsel %vm286_vm13, %v293_v51, %v295_v59  ;;  %v479_v1 = vsel %vm478_vm11, %v853_v42, 0  ;;  %v300_v3 = vsel %vm286_vm13, %v297_v56, %v299_v0 }
  0x3d   :  { %v100_v2 = vadd.s32 536870912, %v99_v57  ;;  %v914_v4 = vmul.u32.u64.low %v851_v41, %v296_v63  ;;  %v915_v5 = vmul.u32.u64.high %v851_v41, %v296_v63, %v914_v4  ;;  %v467_v9 = vand.u32 2147483647, %v838_v17 }
  0x3e   :  { %v919_v6 = vmul.u32.u64.low %v851_v41, %v300_v3  ;;  %v920_v7 = vmul.u32.u64.high %v851_v41, %v300_v3, %v919_v6  ;;  %v308_v10 = vmul.u32 %v851_v41, %v292_v62  ;;  %v481_v42 = vand.u32 31, %v479_v1 }
  0x3f   :  { %v922_v8 = vshrl.u32 %v100_v2, 30  ;;  %v311_v54 = vadd.s32 1, %v915_v5  ;;  %v474_v14 = vand.u32 8388607, %v467_v9  ;;  %v480_v25 = vshrl.u32 %v479_v1, 5 }
  0x40   :  { %vm310_vm1 = vc.u32 %v920_v7, %v914_v4  ;;  %v482_v21 = vsub.s32 32, %v481_v42  ;;  %v484_v26 = vshll.u32 %v803_v44, %v481_v42  ;;  %v487_v31 = vshll.u32 %v804_v46, %v481_v42 }
  0x41   :  { %v102_v11 = vshll.u32 %v922_v8, 30  ;;  %v312_v13 = vsel %vm310_vm1, %v311_v54, %v915_v5  ;;  %v475_v41 = vor.u32 8388608, %v474_v14  ;;  %v490_v34 = vshll.u32 %v805_v48, %v481_v42 }
  0x42   :  { %v313_v19 = vadd.s32 %v312_v13, %v308_v10  ;;  %v485_v30 = vshrl.u32 %v804_v46, %v482_v21  ;;  %v488_v32 = vshrl.u32 %v805_v48, %v482_v21  ;;  %v491_v35 = vshrl.u32 %v806_v50, %v482_v21 }
  0x43   :  { %v103_v12 = vsub.s32 %v99_v57, %v102_v11  ;;  %v493_v36 = vshll.u32 %v806_v50, %v481_v42  ;;  %v494_v38 = vshrl.u32 %v807_v52, %v482_v21  ;;  %v95_v43 = vadd.s32 %v885_v28, %v882_v27 }
  0x44   :  { %v314_v23 = vadd.s32 536870912, %v313_v19  ;;  %vm499_vm2 = vcmp.lt.s32.totalorder %v480_v25, 1  ;;  %v946_v47 = vshll.u32 %v475_v41, 8  ;;  %v486_v49 = vor.u32 %v485_v30, %v484_v26 }
  0x45   :  { %v105_v22 = vsub.s32 0, %v103_v12  ;;  %v496_v40 = vshll.u32 %v807_v52, %v481_v42  ;;  %v497_v48 = vshrl.u32 %v808_v60, %v482_v21  ;;  %v489_v51 = vor.u32 %v488_v32, %v487_v31 }
  0x46   :  { %v934_v29 = vshrl.u32 %v314_v23, 30  ;;  %v492_v50 = vor.u32 %v491_v35, %v490_v34  ;;  %v495_v39 = vor.u32 %v494_v38, %v493_v36  ;;  %v483_v56 = vshrl.u32 %v803_v44, %v482_v21 }
  0x47   :  { %v695_v24 = vmin.u32 %v105_v22, %v103_v12  ;;  %vm502_vm4 = vcmp.lt.s32.totalorder %v480_v25, 4  ;;  %v498_v61 = vor.u32 %v497_v48, %v496_v40  ;;  %vm500_vm5 = vcmp.lt.s32.totalorder %v480_v25, 2 }
  0x48   :  { %v316_v37 = vshll.u32 %v934_v29, 30  ;;  %v504_v58 = vsel %vm502_vm4, %v492_v50, 2102212464  ;;  %vm501_vm6 = vcmp.lt.s32.totalorder %v480_v25, 3  ;;  %v507_v62 = vsel %vm499_vm2, %v486_v49, %v489_v51 }
  0x49   :  { %v107_v33 = vclz %v695_v24  ;;  %v508_v63 = vsel %vm502_vm4, %v495_v39, 920167782  ;;  %v125_v0 = vsub.s32 4, %v922_v8  ;;  %v503_v44 = vsel %vm499_vm2, %v483_v56, %v486_v49 }
  0x4a   :  { %v317_v46 = vsub.s32 %v313_v19, %v316_v37  ;;  %v505_v2 = vsel %vm501_vm6, %v489_v51, %v504_v58  ;;  %v509_v6 = vsel %vm501_vm6, %v492_v50, %v508_v63  ;;  %v511_v10 = vsel %vm499_vm2, %v489_v51, %v492_v50 }
  0x4b   :  { %v696_v45 = vadd.s32 4294967294, %v107_v33  ;;  %v309_v42 = vadd.s32 %v914_v4, %v920_v7  ;;  %v510_v54 = vsel %vm500_vm5, %v507_v62, %v509_v6  ;;  %v506_v19 = vsel %vm500_vm5, %v503_v44, %v505_v2 }
  0x4c   :  { %v319_v55 = vsub.s32 0, %v317_v46  ;;  %v967_v23 = vmul.u32.u64.low %v946_v47, %v510_v54  ;;  %v968_v24 = vmul.u32.u64.high %v946_v47, %v510_v54, %v967_v23  ;;  %v522_v34 = vmul.u32 %v946_v47, %v506_v19 }
  0x4d   :  { %vm697_vm3 = vcmp.lt.s32.totalorder %v696_v45, 0  ;;  %vm41_vm8 = vcmp.lt.s32.totalorder %v834_v15, 0  ;;  %vm40_vm9 = vcmp.le.f32.partialorder %v39_v18, 0.7853982  ;;  %vm255_vm11 = vcmp.lt.s32.totalorder %v836_v16, 0 }
  0x4e   :  { %v110_v53 = vsel %vm697_vm3, 0, %v696_v45  ;;  %v703_v59 = vmin.u32 %v319_v55, %v317_v46  ;;  %v525_v36 = vadd.s32 1, %v968_v24  ;;  %v126_v38 = vsel %vm41_vm8, %v125_v0, %v922_v8 }
  0x4f   :  { %v111_v27 = vsub.s32 32, %v110_v53  ;;  %v112_v28 = vshll.u32 %v103_v12, %v110_v53  ;;  %v115_v57 = vsub.s32 4294967266, %v110_v53  ;;  %v512_v12 = vsel %vm502_vm4, %v498_v61, 1326507024 }
  0x50   :  { %v321_v1 = vclz %v703_v59  ;;  %v513_v21 = vsel %vm501_vm6, %v495_v39, %v512_v12  ;;  %v128_v48 = vsel %vm40_vm9, 0, %v126_v38  ;;  %v339_v8 = vsub.s32 4, %v934_v29 }
  0x51   :  { %v113_v52 = vshrl.u32 %v95_v43, %v111_v27  ;;  %v116_v60 = vadd.s32 127, %v115_v57  ;;  %v514_v22 = vsel %vm500_vm5, %v511_v10, %v513_v21  ;;  %v132_v53 = vadd.s32 3, %v128_v48 }
  0x52   :  { %v704_v11 = vadd.s32 4294967294, %v321_v1  ;;  %v972_v41 = vmul.u32.u64.low %v946_v47, %v514_v22  ;;  %v973_v26 = vmul.u32.u64.high %v946_v47, %v514_v22, %v972_v41  ;;  %vm254_vm12 = vcmp.le.f32.partialorder %v253_v20, 0.7853982 }
  0x53   :  { %v114_v3 = vor.u32 %v113_v52, %v112_v28  ;;  %v117_v5 = vshll.u32 %v116_v60, 23  ;;  %v340_v57 = vsel %vm255_vm11, %v339_v8, %v934_v29  ;;  %v133_v58 = vand.u32 3, %v132_v53 }
  0x54   :  { %vm705_vm7 = vcmp.lt.s32.totalorder %v704_v11, 0  ;;  %vm524_vm10 = vc.u32 %v973_v26, %v967_v23  ;;  %v237_v59 = vand.u32 3, %v128_v48  ;;  %v342_v62 = vsel %vm254_vm12, 0, %v340_v57 }
  0x55   :  { %v118_v13 = vor.u32 4788187, %v117_v5  ;;  %v121_v14 = vcvt.s32.f32 %v114_v3  ;;  %v324_v7 = vsel %vm705_vm7, 0, %v704_v11  ;;  %vm138_vm13 = vcmp.eq.s32.totalorder %v133_v58, 2 }
  0x56   :  { %v325_v30 = vsub.s32 32, %v324_v7  ;;  %v326_v31 = vshll.u32 %v317_v46, %v324_v7  ;;  %v329_v32 = vsub.s32 4294967266, %v324_v7  ;;  %v526_v46 = vsel %vm524_vm10, %v525_v36, %v968_v24 }
  0x57   :  { %v119_v4 = vand.u32 2147483647, %v118_v13  ;;  %v527_v49 = vadd.s32 %v526_v46, %v522_v34  ;;  %vm242_vm14 = vcmp.eq.s32.totalorder %v237_v59, 2  ;;  %vm135_vm15 = vcmp.eq.s32.totalorder %v133_v58, 0 }
  0x58   :  { %v327_v25 = vshrl.u32 %v309_v42, %v325_v30  ;;  %v330_v35 = vadd.s32 127, %v329_v32  ;;  %vm239_vm0 = vcmp.eq.s32.totalorder %v237_v59, 0  ;;  %v346_v2 = vadd.s32 3, %v342_v62 }
  0x59   :  { %v122_v33 = vmul.f32 %v121_v14, %v119_v4  ;;  %v528_v39 = vadd.s32 536870912, %v527_v49  ;;  %vm134_vm1 = vcmp.lt.s32.totalorder %v133_v58, 2  ;;  %vm238_vm2 = vcmp.lt.s32.totalorder %v237_v59, 2 }
  0x5a   :  { %v328_v43 = vor.u32 %v327_v25, %v326_v31  ;;  %v331_v45 = vshll.u32 %v330_v35, 23  ;;  %vm131_vm3 = vweird.f32 %v834_v15  ;;  %v347_v13 = vand.u32 3, %v346_v2 }
  0x5b   :  { %v123_v37 = vxor.u32 2147483648, %v122_v33  ;;  %v986_v55 = vshrl.u32 %v528_v39, 30  ;;  %v451_v14 = vand.u32 3, %v342_v62  ;;  %v523_v22 = vadd.s32 %v967_v23, %v973_v26 }
  0x5c   :  { %v332_v51 = vor.u32 4788187, %v331_v45  ;;  %v335_v50 = vcvt.s32.f32 %v328_v43  ;;  %vm352_vm5 = vcmp.eq.s32.totalorder %v347_v13, 2  ;;  %vm348_vm10 = vcmp.lt.s32.totalorder %v347_v13, 2 }
  0x5d   :  { %v124_v47 = vsel %vm41_vm8, %v123_v37, %v122_v33  ;;  %v530_v27 = vshll.u32 %v986_v55, 30  ;;  %vm453_vm6 = vcmp.eq.s32.totalorder %v451_v14, 0  ;;  %vm456_vm7 = vcmp.eq.s32.totalorder %v451_v14, 2 }
  0x5e   :  { %v127_v40 = vsel %vm40_vm9, %v834_v15, %v124_v47  ;;  %v333_v18 = vand.u32 2147483647, %v332_v51  ;;  %vm349_vm8 = vcmp.eq.s32.totalorder %v347_v13, 0  ;;  %vm345_vm9 = vweird.f32 %v836_v16 }
  0x5f   :  { %741 = vcosq.f32 %v127_v40  ;;  %v531_v61 = vsub.s32 %v527_v49, %v530_v27 }
  0x60   :  { %743 = vsinq.f32 %v127_v40  ;;  %v336_v56 = vmul.f32 %v335_v50, %v333_v18 }
  0x61   :  { %v533_v63 = vsub.s32 0, %v531_v61 }
  0x62   :  { %v337_v28 = vxor.u32 2147483648, %v336_v56 }
  0x63   :  { %v711_v1 = vmin.u32 %v533_v63, %v531_v61 }
  0x64   :  { %v338_v52 = vsel %vm255_vm11, %v337_v28, %v336_v56  ;;  %vm452_vm11 = vcmp.lt.s32.totalorder %v451_v14, 2 }
  0x65   :  { %v341_v60 = vsel %vm254_vm12, %v836_v16, %v338_v52  ;;  %v535_v3 = vclz %v711_v1  ;;  %v553_v16 = vsub.s32 4, %v986_v55  ;;  %vm469_vm12 = vcmp.lt.s32.totalorder %v838_v17, 0 }
  0x66   :  { %745 = vcosq.f32 %v341_v60 }
  0x67   :  { %747 = vsinq.f32 %v341_v60  ;;  %v712_v11 = vadd.s32 4294967294, %v535_v3  ;;  %v554_v50 = vsel %vm469_vm12, %v553_v16, %v986_v55 }
  0x69   :  { %v742_v0 = vpop.eup %741  ;;  %vm713_vm4 = vcmp.lt.s32.totalorder %v712_v11, 0 }
  0x6a   :  { %v744_v44 = vpop.eup %743  ;;  %v139_v20 = vxor.u32 2147483648, %v742_v0  ;;  %v538_v24 = vsel %vm713_vm4, 0, %v712_v11  ;;  %vm559_vm4 = vweird.f32 %v838_v17 }
  0x6b   :  { %v136_v29 = vxor.u32 2147483648, %v744_v44  ;;  %v539_v4 = vsub.s32 32, %v538_v24  ;;  %v540_v15 = vshll.u32 %v531_v61, %v538_v24  ;;  %v543_v7 = vsub.s32 4294967266, %v538_v24 }
  0x6c   :  { %v140_v5 = vsel %vm138_vm13, %v139_v20, %v744_v44  ;;  %v244_v6 = vsel %vm242_vm14, %v139_v20, %v744_v44  ;;  %vm468_vm13 = vcmp.le.f32.partialorder %v467_v9, 0.7853982 }
  0x6d   :  { %v137_v10 = vsel %vm135_vm15, %v742_v0, %v136_v29  ;;  %v241_v42 = vsel %vm239_vm0, %v742_v0, %v136_v29  ;;  %v541_v32 = vshrl.u32 %v523_v22, %v539_v4  ;;  %v544_v33 = vadd.s32 127, %v543_v7 }
  0x6e   :  { %v141_v54 = vsel %vm134_vm1, %v137_v10, %v140_v5  ;;  %v245_v12 = vsel %vm238_vm2, %v241_v42, %v244_v6  ;;  %v556_v8 = vsel %vm468_vm13, 0, %v554_v50 }
  0x6f   :  { %v142_v19 = vsel %vm131_vm3, nan, %v141_v54  ;;  %v246_v21 = vsel %vm131_vm3, nan, %v245_v12  ;;  %v542_v25 = vor.u32 %v541_v32, %v540_v15  ;;  %v545_v35 = vshll.u32 %v544_v33, 23 }
  0x70   :  { %143 = vst [vmem:[#allocation5] sm:$0x3f] %v142_v19  ;;  %247 = vst [vmem:[#allocation5 + $0x12] sm:$0x3f] %v246_v21  ;;  %v746_v41 = vpop.eup %745  ;;  %v560_v53 = vadd.s32 3, %v556_v8  ;;  %v665_v27 = vand.u32 3, %v556_v8 }
  0x71   :  { %v748_v30 = vpop.eup %747  ;;  %v353_v31 = vxor.u32 2147483648, %v746_v41  ;;  %v546_v45 = vor.u32 4788187, %v545_v35  ;;  %v549_v46 = vcvt.s32.f32 %v542_v25 }
  0x72   :  { %v350_v23 = vxor.u32 2147483648, %v748_v30  ;;  %v561_v56 = vand.u32 3, %v560_v53  ;;  %vm670_vm15 = vcmp.eq.s32.totalorder %v665_v27, 2  ;;  %vm667_vm1 = vcmp.eq.s32.totalorder %v665_v27, 0 }
  0x73   :  { %v354_v26 = vsel %vm352_vm5, %v353_v31, %v748_v30  ;;  %v458_v34 = vsel %vm456_vm7, %v353_v31, %v748_v30  ;;  %v547_v40 = vand.u32 2147483647, %v546_v45  ;;  %vm666_vm3 = vcmp.lt.s32.totalorder %v665_v27, 2 }
  0x74   :  { %v351_v36 = vsel %vm349_vm8, %v746_v41, %v350_v23  ;;  %v455_v37 = vsel %vm453_vm6, %v746_v41, %v350_v23  ;;  %vm566_vm14 = vcmp.eq.s32.totalorder %v561_v56, 2  ;;  %vm563_vm0 = vcmp.eq.s32.totalorder %v561_v56, 0 }
  0x75   :  { %v355_v38 = vsel %vm348_vm10, %v351_v36, %v354_v26  ;;  %v459_v43 = vsel %vm452_vm11, %v455_v37, %v458_v34  ;;  %v550_v48 = vmul.f32 %v549_v46, %v547_v40  ;;  %vm562_vm2 = vcmp.lt.s32.totalorder %v561_v56, 2 }
  0x76   :  { %v356_v47 = vsel %vm345_vm9, nan, %v355_v38  ;;  %v460_v49 = vsel %vm345_vm9, nan, %v459_v43 }
  0x77   :  { %357 = vst [vmem:[#allocation5 + $0x6] sm:$0x3f] %v356_v47  ;;  %461 = vst [vmem:[#allocation5 + $0x18] sm:$0x3f] %v460_v49  ;;  %v551_v51 = vxor.u32 2147483648, %v550_v48 }
  0x79   :  { %v552_v39 = vsel %vm469_vm12, %v551_v51, %v550_v48 }
  0x7a   :  { %v555_v18 = vsel %vm468_vm13, %v838_v17, %v552_v39 }
  0x7b   :  { %749 = vcosq.f32 %v555_v18 }
  0x7c   :  { %751 = vsinq.f32 %v555_v18 }
  0x85   :  { %v750_v28 = vpop.eup %749 }
  0x86   :  { %v752_v57 = vpop.eup %751  ;;  %v567_v58 = vxor.u32 2147483648, %v750_v28 }
  0x87   :  { %v564_v9 = vxor.u32 2147483648, %v752_v57 }
  0x88   :  { %v568_v55 = vsel %vm566_vm14, %v567_v58, %v752_v57  ;;  %v672_v59 = vsel %vm670_vm15, %v567_v58, %v752_v57 }
  0x89   :  { %v565_v61 = vsel %vm563_vm0, %v750_v28, %v564_v9  ;;  %v669_v52 = vsel %vm667_vm1, %v750_v28, %v564_v9 }
  0x8a   :  { %v569_v60 = vsel %vm562_vm2, %v565_v61, %v568_v55  ;;  %v673_v62 = vsel %vm666_vm3, %v669_v52, %v672_v59 }
  0x8b   :  { %v570_v63 = vsel %vm559_vm4, nan, %v569_v60  ;;  %v674_v0 = vsel %vm559_vm4, nan, %v673_v62 }
  0x8c   :  { %571 = vst [vmem:[#allocation5 + $0xc] sm:$0x3f] %v570_v63  ;;  %675 = vst [vmem:[#allocation5 + $0x1e] sm:$0x3f] %v674_v0 }
  0x8d   :  { %786 = shalt.err (!%p783_p12)
}
  0x8e   :  { %s787_s22 = scalar_lea.hbm %s1019_s1, 640 }
  0x8f   :  { %p788_p13 = scmp.ne.s32.totalorder %s1019_s1, %s787_s22  ;;  %p791_p0 = scmp.lt.u32.totalorder %s787_s22, %s1019_s1 }
  0x91   :  { %p793_p1 = pnand %p791_p0, %p788_p13 }
  0x93   :  { %796 = shalt.err (!%p793_p1)
}
  0x94   :  { %s810_s27 = smov 128   ;;  %s811_s28 = smov 8  }
  0x95   :  { %688 = dma.vmem_to_hbm [thread:$0]  %s683_s18, 640, %s1019_s1, [#allocation4], %s810_s27, %s810_s27, %s811_s28  }
  0x96   :  { %799 = dma.done.wait [#allocation4], 640  }
  0x97   :  { %800 = vsyncadd [#allocation4], 4294966656 }
  0x98   :  { %692 = vsyncpa [#allocation3], 1 }
  0x99   :  { %693 = vsyncpa [#allocation4], 1 }

</bundles_post_ra>
